<compile_context>
chip_gen: v7x
topology: tpu7x:2x2x1
jax: 0.10.0
libtpu: 0.0.40
codegen_flags: <defaults>
</compile_context>

<pallas_src>
import jax
import jax.numpy as jnp
from jax.experimental import pallas as pl
from jax.experimental.pallas import tpu as pltpu

BETA = 1.0
THRESHOLD = 20.0


def softplus_kernel(x_ref, o_ref):
    x = x_ref[...]
    # bf16 I/O -> compute in bf16 (EUP throughput ~2x f32, halves vreg
    # pressure; keeps v7x at the HBM roofline). Everything else computes in
    # f32 (safe on v5e, and f32 I/O is HBM-bound on all generations).
    compute_dtype = jnp.bfloat16 if x.dtype == jnp.bfloat16 else jnp.float32
    xf = x.astype(compute_dtype)
    bx = xf if BETA == 1.0 else xf * BETA
    # Numerically stable softplus: max(bx, 0) + log1p(exp(-|bx|)).
    # exp(-|bx|) in (0, 1] -> never overflows, underflows gracefully.
    # TODO(synk): if a v7x bundle dump shows the EUP slot saturating for f32
    # I/O, replace log1p(t) with a short VPU polynomial (t in (0,1]) so only
    # the exp remains on the EUP.
    soft = jnp.maximum(bx, 0) + jnp.log1p(jnp.exp(-jnp.abs(bx)))
    if BETA != 1.0:
        soft = soft * (1.0 / BETA)
    # Exact PyTorch threshold semantics: pass x through where beta*x > 20.
    o_ref[...] = jnp.where(bx > THRESHOLD, xf, soft).astype(o_ref.dtype)


def _tpu_vmem_capacity_bytes():
    try:
        return pltpu.get_tpu_info().vmem_capacity_bytes
    except Exception:
        return None


def _pick_lane_width(n):
    """Widest lane-dense last dim that divides n AND leaves >= 8 sublane rows."""
    divisors = [w for w in (2048, 1024, 512, 256, 128) if n % w == 0]
    for w in divisors:
        if n // w >= 8:
            return w, False
    if divisors:
        # Tiny tensor (< 8 full rows even at lane=128): take the narrowest
        # divisor so the sublane dim is as full as possible.
        return divisors[-1], False
    return 128, True  # ragged: n % 128 != 0, needs padding


def softplus_pallas(x):
    orig_shape = x.shape
    orig_dtype = x.dtype
    n = x.size
    itemsize = jnp.dtype(orig_dtype).itemsize

    # Generation-aware knobs.
    vmem_cap = _tpu_vmem_capacity_bytes()
    if vmem_cap is not None and vmem_cap > (100 << 20):  # v5e / v6e (128 MiB)
        vmem_limit = 48 << 20
        max_block_rows = 1024
    else:                                                 # v7x (64 MiB) / unknown
        vmem_limit = 32 << 20
        max_block_rows = 512

    lane, needs_pad = _pick_lane_width(n)
    flat = jnp.ravel(x)
    if needs_pad:
        # Rare ragged path (n % 128 != 0): pad to the next lane multiple.
        # TODO(synk): fold the <128-element tail into the last grid step with a
        # masked store to avoid this extra HBM pass on ragged sizes.
        n_pad = pl.cdiv(n, lane) * lane
        flat = jnp.pad(flat, (0, n_pad - n))
    rows = flat.size // lane
    slab = flat.reshape(rows, lane)

    slab_bytes = rows * lane * itemsize
    if slab_bytes <= (2 << 20) or rows <= 8:
        # Small slab: a single grid step; splitting only adds step overhead.
        # (block == full array extent, so the (8,128) tiling rule is waived.)
        block_rows = rows
    else:
        # Guarantee >= 4 grid steps so the "parallel" axis can be sharded
        # across v7x's two TensorCores and DMA overlaps compute within each.
        target = max(8, ((rows // 4) // 8) * 8)
        block_rows = min(target, max_block_rows)
    grid = (pl.cdiv(rows, block_rows),)

    out = pl.pallas_call(
        softplus_kernel,
        out_shape=jax.ShapeDtypeStruct(slab.shape, orig_dtype),
        grid=grid,
        in_specs=[pl.BlockSpec((block_rows, lane), lambda i: (i, 0))],
        out_specs=pl.BlockSpec((block_rows, lane), lambda i: (i, 0)),
        compiler_params=pltpu.CompilerParams(
            dimension_semantics=("parallel",),
            vmem_limit_bytes=vmem_limit,
        ),
    )(slab)

    if needs_pad:
        out = out.reshape(-1)[:n]
    return out.reshape(orig_shape)


def softplus_ref(x):
    xf = x.astype(jnp.float32)
    bx = BETA * xf
    soft = (jnp.maximum(bx, 0.0) + jnp.log1p(jnp.exp(-jnp.abs(bx)))) / BETA
    return jnp.where(bx > THRESHOLD, xf, soft).astype(x.dtype)


if __name__ == "__main__":
    key = jax.random.PRNGKey(0)
    # NCHW input, like the PyTorch module would receive.
    x = jax.random.normal(key, (2, 4, 16, 16), dtype=jnp.float32) * 10.0

    y = softplus_pallas(x)
    jax.block_until_ready(y)

    y_ref = softplus_ref(x)
    assert y.shape == x.shape and y.dtype == x.dtype
    assert jnp.allclose(y, y_ref, atol=1e-5, rtol=1e-5)

    print("KERNEL_OK")
</pallas_src>

<mosaic_0001>
module attributes {stable_mosaic.version = 11 : i64} {
  func.func @softplus_kernel(%arg0: i32, %arg1: memref<8x256xf32, #tpu.memory_space<vmem>>, %arg2: memref<8x256xf32, #tpu.memory_space<vmem>>) attributes {dimension_semantics = [#tpu.dimension_semantics<parallel>], iteration_bounds = array<i64: 1>, scalar_prefetch = 0 : i64, scratch_operands = 0 : i64, tpu.core_type = #tpu.core_type<tc>, window_params = [{transform_indices = @transform_0, window_bounds = array<i64: 8, 256>}, {transform_indices = @transform_1, window_bounds = array<i64: 8, 256>}]} {
    %c0 = arith.constant 0 : index
    %c0_0 = arith.constant 0 : index
    %0 = vector.load %arg1[%c0, %c0_0] : memref<8x256xf32, #tpu.memory_space<vmem>>, vector<8x256xf32>
    %cst = arith.constant 0.000000e+00 : f32
    %1 = vector.broadcast %cst : f32 to vector<8x256xf32>
    %2 = arith.maximumf %0, %1 : vector<8x256xf32>
    %3 = math.absf %0 : vector<8x256xf32>
    %cst_1 = arith.constant 0.000000e+00 : f32
    %4 = vector.broadcast %cst_1 : f32 to vector<8x256xf32>
    %5 = arith.subf %4, %3 : vector<8x256xf32>
    %6 = math.exp %5 : vector<8x256xf32>
    %7 = math.log1p %6 : vector<8x256xf32>
    %8 = arith.addf %2, %7 : vector<8x256xf32>
    %cst_2 = arith.constant 2.000000e+01 : f32
    %9 = vector.broadcast %cst_2 : f32 to vector<8x256xf32>
    %10 = arith.cmpf ogt, %0, %9 : vector<8x256xf32>
    %11 = arith.select %10, %0, %8 : vector<8x256xi1>, vector<8x256xf32>
    %c0_3 = arith.constant 0 : index
    %c0_4 = arith.constant 0 : index
    %12 = vector.load %arg2[%c0_3, %c0_4] : memref<8x256xf32, #tpu.memory_space<vmem>>, vector<8x256xf32>
    tpu.vector_store %arg2[%c0_3, %c0_4], %11 {strides = array<i32>} : memref<8x256xf32, #tpu.memory_space<vmem>>, vector<8x256xf32>,
    return
  }
  func.func @transform_0(%arg0: i32) -> (i32, i32) {
    %c0_i32 = arith.constant 0 : i32
    %c0_i32_0 = arith.constant 0 : i32
    return %arg0, %c0_i32 : i32, i32
  }
  func.func @transform_1(%arg0: i32) -> (i32, i32) {
    %c0_i32 = arith.constant 0 : i32
    %c0_i32_0 = arith.constant 0 : i32
    return %arg0, %c0_i32 : i32, i32
  }
}

</mosaic_0001>

<bundles_post_ra>
// kernel: tpu_custom_call.1
= control target key start
LH: loop header
LB: loop body
LE: loop exit
PB: predicated region body
PF: predicated region fallthrough
CT: control target
= control target key end

     0   :  { %6 = vsyncpa [#allocation3], 0  ;;  %s168_s0 = inlined_call_operand.hbm [shape: f32[8,256], index: 0, kind: input, shape index: {}]   ;;  %s169_s1 = inlined_call_operand.hbm [shape: f32[8,256], index: 1, kind: output, shape index: {}]  }
   0x1   :  { %7 = vsyncpa [#allocation4], 0  ;;  %s132_s6 = smov [#allocation2]   ;;  %s84_s10 = scalar_lea.hbm %s168_s0, 256 }
   0x2   :  { %s14_s7 = sshll.u32 %s132_s6, 4  ;;  %p85_p0 = scmp.ne.s32.totalorder %s168_s0, %s84_s10  ;;  %s15_s7 = int_to_ptr.vmem [resolvable:$true] %s14_s7 }
   0x3   :  { %p88_p1 = scmp.lt.u32.totalorder %s84_s10, %s168_s0 }
   0x5   :  { %p90_p2 = pnand %p88_p1, %p85_p0 }
   0x7   :  { %93 = shalt.err (!%p90_p2)
}
   0x8   :  { %s94_s15 = scalar_lea.vmem %s15_s7, 256  ;;  %p99_p4 = scmp.lt.s32.totalorder %s15_s7, %s15_s7 }
   0x9   :  { %p95_p3 = scmp.ne.s32.totalorder %s15_s7, %s94_s15  ;;  %p100_p5 = scmp.lt.s32.totalorder %s94_s15, %s94_s15 }
   0xb   :  { %p101_p6 = por %p100_p5, %p99_p4 }
   0xd   :  { %p102_p7 = pnand %p101_p6, %p95_p3 }
   0xf   :  { %105 = shalt.err (!%p102_p7)
}
  0x10   :  { %17 = dma.hbm_to_vmem [thread:$0]  %s168_s0, 256, %s15_s7, [#allocation3]  }
  0x11   :  { %128 = dma.done.wait [#allocation3], 256  }
  0x12   :  { %129 = vsyncadd [#allocation3], 4294967040  ;;  %v21_v0 = vld [vmem:[#allocation2] sm:$0xff]  ;;  %v22_v1 = vld [vmem:[#allocation2 + $0x8] sm:$0xff]  ;;  %s133_s0 = smov [#allocation5]  }
  0x13   :  { %v25_v2 = vand.u32 2147483647, %v21_v0  ;;  %v26_v3 = vand.u32 2147483647, %v22_v1  ;;  %v23_v20 = vmax.f32 %v21_v0, 0.0  ;;  %v24_v24 = vmax.f32 %v22_v1, 0.0 }
  0x14   :  { %vm53_vm2 = vcmp.gt.f32.partialorder %v21_v0, 20.0  ;;  %s65_s18 = sshll.u32 %s133_s0, 4  ;;  %vm54_vm3 = vcmp.gt.f32.partialorder %v22_v1, 20.0  ;;  %s66_s18 = int_to_ptr.vmem [resolvable:$true] %s65_s18 }
  0x15   :  { %v27_v4 = vsub.f32 0.0, %v25_v2  ;;  %v28_v5 = vsub.f32 0.0, %v26_v3  ;;  %s106_s19 = scalar_lea.vmem %s66_s18, 256  ;;  %p111_p9 = scmp.lt.s32.totalorder %s66_s18, %s66_s18 }
  0x16   :  { %p107_p8 = scmp.ne.s32.totalorder %s66_s18, %s106_s19  ;;  %p112_p10 = scmp.lt.s32.totalorder %s106_s19, %s106_s19 }
  0x17   :  { %v29_v6 = vmul.f32 1.442695, %v27_v4  ;;  %v31_v7 = vmul.f32 1.442695, %v28_v5 }
  0x18   :  { %p113_p11 = por %p112_p10, %p111_p9 }
  0x19   :  { %76 = vpow2.f32 %v29_v6 }
  0x1a   :  { %78 = vpow2.f32 %v31_v7  ;;  %p114_p12 = pnand %p113_p11, %p107_p8 }
  0x23   :  { %v77_v8 = vpop.eup %76 }
  0x24   :  { %v79_v9 = vpop.eup %78  ;;  %v33_v10 = vadd.f32 1.0, %v77_v8  ;;  %v36_v12 = vmul.f32 -0.5, %v77_v8  ;;  %v39_v15 = vand.u32 2147483647, %v77_v8 }
  0x25   :  { %v42_v11 = vadd.f32 1.0, %v79_v9  ;;  %v45_v13 = vmul.f32 -0.5, %v79_v9  ;;  %v48_v17 = vand.u32 2147483647, %v79_v9 }
  0x26   :  { %80 = vlog2.f32 %v33_v10  ;;  %v37_v14 = vadd.f32 1.0, %v36_v12  ;;  %vm40_vm0 = vcmp.lt.f32.partialorder %v39_v15, 0.0004427343 }
  0x27   :  { %82 = vlog2.f32 %v42_v11  ;;  %v46_v16 = vadd.f32 1.0, %v45_v13  ;;  %vm49_vm1 = vcmp.lt.f32.partialorder %v48_v17, 0.0004427343 }
  0x28   :  { %v38_v18 = vmul.f32 %v77_v8, %v37_v14 }
  0x29   :  { %v47_v21 = vmul.f32 %v79_v9, %v46_v16 }
  0x30   :  { %v81_v19 = vpop.eup %80 }
  0x31   :  { %v83_v22 = vpop.eup %82  ;;  %v35_v23 = vmul.f32 0.6931472, %v81_v19 }
  0x32   :  { %v44_v25 = vmul.f32 0.6931472, %v83_v22 }
  0x33   :  { %v41_v26 = vsel %vm40_vm0, %v38_v18, %v35_v23 }
  0x34   :  { %v51_v27 = vadd.f32 %v41_v26, %v23_v20  ;;  %v50_v28 = vsel %vm49_vm1, %v47_v21, %v44_v25 }
  0x35   :  { %v52_v29 = vadd.f32 %v50_v28, %v24_v24 }
  0x36   :  { %v55_v30 = vsel %vm53_vm2, %v21_v0, %v51_v27 }
  0x37   :  { %57 = vst [vmem:[#allocation5] sm:$0xff] %v55_v30  ;;  %v56_v31 = vsel %vm54_vm3, %v22_v1, %v52_v29 }
  0x38   :  { %58 = vst [vmem:[#allocation5 + $0x8] sm:$0xff] %v56_v31 }
  0x39   :  { %117 = shalt.err (!%p114_p12)
}
  0x3a   :  { %s118_s22 = scalar_lea.hbm %s169_s1, 256 }
  0x3b   :  { %p119_p13 = scmp.ne.s32.totalorder %s169_s1, %s118_s22  ;;  %p122_p0 = scmp.lt.u32.totalorder %s118_s22, %s169_s1 }
  0x3d   :  { %p124_p1 = pnand %p122_p0, %p119_p13 }
  0x3f   :  { %127 = shalt.err (!%p124_p1)
}
  0x40   :  { %68 = dma.vmem_to_hbm [thread:$0]  %s66_s18, 256, %s169_s1, [#allocation4]  }
  0x41   :  { %130 = dma.done.wait [#allocation4], 256  }
  0x42   :  { %131 = vsyncadd [#allocation4], 4294967040 }
  0x43   :  { %72 = vsyncpa [#allocation3], 1 }
  0x44   :  { %73 = vsyncpa [#allocation4], 1 }

</bundles_post_ra>
